<compile_context>
chip_gen: v7x
topology: tpu7x:2x2x1
jax: 0.10.0
libtpu: 0.0.40
codegen_flags: <defaults>
</compile_context>

<pallas_src>
import jax
import jax.numpy as jnp
from jax.experimental import pallas as pl
from jax.experimental.pallas import tpu as pltpu


def _maxout_kernel(x_ref, o_ref):
    # x_ref, o_ref: (rt, hwt) lane-dense VMEM blocks.
    # Grid = (row_tiles, hw_tiles, pool); pool is the innermost reduction axis,
    # the output block stays resident in VMEM across it.
    p = pl.program_id(2)

    @pl.when(p == 0)
    def _init():
        o_ref[...] = x_ref[...]

    @pl.when(p > 0)
    def _acc():
        o_ref[...] = jnp.maximum(o_ref[...], x_ref[...])


def _round_up(n, m):
    return ((n + m - 1) // m) * m


def maxout(x, pool_size, *, max_lane_tile=2048, max_block_bytes=2 * 1024 * 1024):
    """x: (B, C, H, W). Returns (B, C // pool_size, H, W)."""
    B, C, H, W = x.shape
    P = int(pool_size)
    assert C % P == 0, "channels must be divisible by pool_size"
    G = C // P
    HW = H * W
    HW_pad = _round_up(HW, 128)  # lane-dense last dim

    # --- plain-JAX glue: free reshapes (+ pad only if HW not lane-aligned).
    x_r = x.reshape(B, C, HW)
    if HW_pad != HW:
        x_r = jnp.pad(x_r, ((0, 0), (0, 0), (0, HW_pad - HW)))
    # Row r = b*G + g, column = p*HW_pad + s  (row-major contiguous => free).
    x2 = x_r.reshape(B * G, P * HW_pad)

    R = B * G
    itemsize = jnp.dtype(x.dtype).itemsize

    # Lane tile: largest multiple of 128 dividing HW_pad, capped at max_lane_tile.
    hwt = min(HW_pad, max_lane_tile)
    hwt -= hwt % 128
    while HW_pad % hwt != 0:
        hwt -= 128
    n_hw = HW_pad // hwt

    # Row tile: full R if small, else a multiple of 8 sized to the VMEM budget
    # (ragged last block is handled by the cdiv grid; OOB rows only feed OOB,
    # masked output rows).
    max_rows = max(8, max_block_bytes // (hwt * itemsize))
    if R <= max_rows:
        rt = R
    else:
        rt = (max_rows // 8) * 8
    n_r = pl.cdiv(R, rt)

    grid = (n_r, n_hw, P)

    in_spec = pl.BlockSpec((rt, hwt), lambda i, j, p: (i, p * n_hw + j))
    out_spec = pl.BlockSpec((rt, hwt), lambda i, j, p: (i, j))

    in_bytes = B * C * HW_pad * itemsize
    out_bytes = R * HW_pad * itemsize
    cost = pl.CostEstimate(
        flops=R * HW_pad * max(P - 1, 0),
        transcendentals=0,
        bytes_accessed=in_bytes + out_bytes,
    )

    out2 = pl.pallas_call(
        _maxout_kernel,
        out_shape=jax.ShapeDtypeStruct((R, HW_pad), x.dtype),
        grid=grid,
        in_specs=[in_spec],
        out_specs=out_spec,
        compiler_params=pltpu.CompilerParams(
            dimension_semantics=("parallel", "parallel", "arbitrary"),
            vmem_limit_bytes=32 * 1024 * 1024,
        ),
        cost_estimate=cost,
    )(x2)

    out = out2[:, :HW] if HW_pad != HW else out2
    return out.reshape(B, G, H, W)


def maxout_ref(x, pool_size):
    B, C, H, W = x.shape
    G = C // pool_size
    return jnp.max(x.reshape(B, G, pool_size, H, W), axis=2)


if __name__ == "__main__":
    key = jax.random.PRNGKey(0)

    # Primary test: shapes implied by the module's forward.
    B, C, H, W, pool = 2, 4, 16, 16, 2
    x = jax.random.normal(key, (B, C, H, W), dtype=jnp.float32)
    y = jax.block_until_ready(maxout(x, pool))
    y_ref = maxout_ref(x, pool)
    assert y.shape == (B, C // pool, H, W)
    assert jnp.allclose(y, y_ref), "Pallas maxout mismatch vs reference"

    # Secondary test: non-lane-aligned spatial extent (exercises padding path).
    x2 = jax.random.normal(jax.random.PRNGKey(1), (2, 8, 7, 7), dtype=jnp.float32)
    y2 = jax.block_until_ready(maxout(x2, 4))
    assert jnp.allclose(y2, maxout_ref(x2, 4)), "Pallas maxout mismatch (padded case)"

    print("KERNEL_OK")
</pallas_src>

<mosaic_0001>
module attributes {stable_mosaic.version = 11 : i64} {
  func.func @_maxout_kernel(%arg0: i32, %arg1: i32, %arg2: i32, %arg3: memref<4x256xf32, #tpu.memory_space<vmem>>, %arg4: memref<4x256xf32, #tpu.memory_space<vmem>>) attributes {dimension_semantics = [#tpu.dimension_semantics<parallel>, #tpu.dimension_semantics<parallel>, #tpu.dimension_semantics<arbitrary>], iteration_bounds = array<i64: 1, 1, 2>, scalar_prefetch = 0 : i64, scratch_operands = 0 : i64, tpu.core_type = #tpu.core_type<tc>, window_params = [{transform_indices = @transform_0, window_bounds = array<i64: 4, 256>}, {transform_indices = @transform_1, window_bounds = array<i64: 4, 256>}]} {
    %c0_i32 = arith.constant 0 : i32
    %0 = arith.cmpi eq, %arg2, %c0_i32 : i32
    %1 = arith.extui %0 : i1 to i32
    %c0_i32_0 = arith.constant 0 : i32
    %2 = arith.cmpi ne, %1, %c0_i32_0 : i32
    scf.if %2 {
      %c0 = arith.constant 0 : index
      %c0_3 = arith.constant 0 : index
      %6 = vector.load %arg3[%c0, %c0_3] : memref<4x256xf32, #tpu.memory_space<vmem>>, vector<4x256xf32>
      %c0_4 = arith.constant 0 : index
      %c0_5 = arith.constant 0 : index
      %7 = vector.load %arg4[%c0_4, %c0_5] : memref<4x256xf32, #tpu.memory_space<vmem>>, vector<4x256xf32>
      tpu.vector_store %arg4[%c0_4, %c0_5], %6 {strides = array<i32>} : memref<4x256xf32, #tpu.memory_space<vmem>>, vector<4x256xf32>,
    } else {
    }
    %c0_i32_1 = arith.constant 0 : i32
    %3 = arith.cmpi sgt, %arg2, %c0_i32_1 : i32
    %4 = arith.extui %3 : i1 to i32
    %c0_i32_2 = arith.constant 0 : i32
    %5 = arith.cmpi ne, %4, %c0_i32_2 : i32
    scf.if %5 {
      %c0 = arith.constant 0 : index
      %c0_3 = arith.constant 0 : index
      %6 = vector.load %arg4[%c0, %c0_3] : memref<4x256xf32, #tpu.memory_space<vmem>>, vector<4x256xf32>
      %c0_4 = arith.constant 0 : index
      %c0_5 = arith.constant 0 : index
      %7 = vector.load %arg3[%c0_4, %c0_5] : memref<4x256xf32, #tpu.memory_space<vmem>>, vector<4x256xf32>
      %8 = arith.maximumf %6, %7 : vector<4x256xf32>
      %c0_6 = arith.constant 0 : index
      %c0_7 = arith.constant 0 : index
      %9 = vector.load %arg4[%c0_6, %c0_7] : memref<4x256xf32, #tpu.memory_space<vmem>>, vector<4x256xf32>
      tpu.vector_store %arg4[%c0_6, %c0_7], %8 {strides = array<i32>} : memref<4x256xf32, #tpu.memory_space<vmem>>, vector<4x256xf32>,
    } else {
    }
    return
  }
  func.func @transform_0(%arg0: i32, %arg1: i32, %arg2: i32) -> (i32, i32) {
    %c1_i32 = arith.constant 1 : i32
    %0 = arith.muli %arg2, %c1_i32 : i32
    %1 = arith.addi %0, %arg1 : i32
    %c0_i32 = arith.constant 0 : i32
    return %arg0, %1 : i32, i32
  }
  func.func @transform_1(%arg0: i32, %arg1: i32, %arg2: i32) -> (i32, i32) {
    %c0_i32 = arith.constant 0 : i32
    return %arg0, %arg1 : i32, i32
  }
}

</mosaic_0001>

<bundles_post_ra>
// kernel: tpu_custom_call.1
= control target key start
LH: loop header
LB: loop body
LE: loop exit
PB: predicated region body
PF: predicated region fallthrough
CT: control target
= control target key end

     0   :  { %6 = vsyncpa [#allocation3], 0  ;;  %s607_s0 = inlined_call_operand.hbm [shape: f32[4,512], index: 0, kind: input, shape index: {}]   ;;  %s608_s1 = inlined_call_operand.hbm [shape: f32[4,256], index: 1, kind: output, shape index: {}]  }
   0x1   :  { %8 = vsyncpa [#allocation3 + $0x1], 0 }
   0x2   :  { %9 = vsyncpa [#allocation4], 0  ;;  %s455_s6 = smov 0   ;;  %s457_s7 = smov 0  }
   0x3   :  { %s459_s8 = smov 0   ;;  %s461_s9 = smov 0  }
   0x4   :  { %s463_s10 = smov 0   ;;  %s465_s11 = smov 0  }
   0x5 LB: > { %s254_s12 = sadd.s32 4294967295, %s441_s11   ;;  %s27_s13 = sadd.s32 1, %s437_s10  ;;  %s441_s11 = sphi %s465_s11, %s15_s11   ;;  %s437_s10 = sphi %s463_s10, %s619_s10   ;;  %s433_s9 = sphi %s461_s9, %s618_s9   ;;  %s429_s8 = sphi %s459_s8, %s617_s8   ;;  %s425_s7 = sphi %s457_s7, %s616_s7   ;;  %s421_s6 = sphi %s455_s6, %s615_s6  }
   0x6   : > { %p28_p0 = scmp.ge.s32.totalorder %s27_s13, 2  ;;  %s45_s14 = sadd.s32 1, %s429_s8 }
   0x7   : > { %p52_p1 = scmp.ne.s32.totalorder %s429_s8, %s425_s7  ;;  %p53_p2 = scmp.eq.s32.totalorder %s441_s11, 0 }
   0x8   : > { %s621_s13 = smov (%p28_p0, %s27_s13), 0  ;;  %p58_p4 = scmp.ne.s32.totalorder %s425_s7, %s421_s6 }
   0x9   : > { %p491_p3 = por %p53_p2, %p52_p1  ;;  %s41_s16 = ssub.s32 %s437_s10, %s621_s13 }
   0xa   : > { %p59_p5 = scmp.eq.s32.totalorder %s254_s12, 0  ;;  %p43_p6 = scmp.eq.s32.totalorder %s41_s16, 0 }
   0xb   : > { %p279_p8 = scmp.lt.s32.totalorder %s441_s11, 2  ;;  %s110_s19 = sand.u32 1, %s429_s8  }
   0xc   : > { %p500_p7 = por %p59_p5, %p58_p4  ;;  %s268_s20 = sshll.u32 %s437_s10, 7 }
   0xd   : > { %s506_s18 = scalar_select %p43_p6, %s429_s8, %s45_s14  }
   0xe   : > { %s257_s21 = sshll.u32 %s110_s19, 3  ;;  %s513_s24 = scalar_lea.hbm %s607_s0, %s268_s20 }
   0xf   : > { %s114_s25 = scalar_lea.vmem [#allocation2], %s257_s21  ;;  %p517_p9 = pnand %p279_p8, %p491_p3 }
  0x10   : > { %s125_s26 = sshll.u32 %s114_s25, 4  ;;  %s111_s28 = scalar_lea.sflag [#allocation3], %s110_s19  ;;  %s521_s26 = int_to_ptr.vmem [resolvable:$true] %s125_s26 }
  0x11   : > { %s331_s29 = scalar_lea.hbm %s513_s24, 128  ;;  %p333_p13 = pneg %p517_p9 }
  0x12   : > { %p332_p12 = scmp.ne.s32.totalorder %s513_s24, %s331_s29  ;;  %s336_s3 = scalar_lea.hbm %s607_s0, 256 }
  0x13   : > { %p337_p2 = scmp.lt.u32.totalorder %s513_s24, %s607_s0  ;;  %p338_p3 = scmp.lt.u32.totalorder %s336_s3, %s331_s29 }
  0x14   : > { %p334_p0 = pnand %p333_p13, %p332_p12  ;;  %p340_p5 = scmp.lt.u32.totalorder %s331_s29, %s513_s24 }
  0x15   : > { %p339_p4 = por %p338_p3, %p337_p2 }
  0x16   : > { %p335_p1 = pneg %p334_p0 }
  0x17   : > { %p341_p6 = por %p340_p5, %p339_p4 }
  0x19   : > { %p342_p8 = pnand %p341_p6, %p335_p1 }
  0x1b   : > { %345 = shalt.err (!%p342_p8)
}
  0x1c   : > { %s346_s6 = scalar_lea.vmem %s521_s26, 128  ;;  %s443_s14 = smov [#allocation2]  }
  0x1d   : > { %p347_p12 = scmp.ne.s32.totalorder %s521_s26, %s346_s6  ;;  %s351_s15 = sshll.u32 %s443_s14, 4  ;;  %s352_s15 = int_to_ptr.vmem [resolvable:$false] %s351_s15 }
  0x1e   : > { %s353_s16 = scalar_lea.vmem %s352_s15, 256  ;;  %p354_p11 = scmp.lt.s32.totalorder %s521_s26, %s352_s15 }
  0x1f   : > { %p349_p0 = pnand %p347_p12, %p333_p13  ;;  %p355_p2 = scmp.lt.s32.totalorder %s353_s16, %s346_s6 }
  0x21   : > { %p350_p10 = pneg %p349_p0  ;;  %p356_p3 = por %p355_p2, %p354_p11 }
  0x23   : > { %p357_p4 = pnand %p356_p3, %p350_p10 }
  0x25   : > { %360 = shalt.err (!%p357_p4)
}
  0x26   : > { %278 = dma.hbm_to_vmem [thread:$0]  (!%p517_p9), %s513_s24, 128, %s521_s26, %s111_s28  }
  0x27   : > { %p612_p1 = scmp.lt.s32.totalorder %s441_s11, 3  ;;  %p613_p5 = scmp.ge.s32.totalorder %s441_s11, 1 }
  0x29   : > { %p131_p13 = pnand %p613_p5, %p612_p1 }
  0x2a   : > { %s136_s19 = sand.u32 (!%p131_p13), 1, %s425_s7  }
  0x2b   : > { %134 = sbr.rel (%p131_p13) target bundleno = 94 (0x5e), region = 24  ;;  %s261_s20 = sshll.u32 (!%p131_p13), %s136_s19, 3 }
  0x2c   : > { %s137_s21 = scalar_lea.sflag (!%p131_p13), [#allocation3], %s136_s19  ;;  %s140_s22 = scalar_lea.vmem (!%p131_p13), [#allocation2], %s261_s20 }
  0x32   : > { %412 = dma.done.wait (%p500_p7), %s137_s21, 128  }
  0x33   : > { %414 = vsyncadd (%p500_p7), %s137_s21, 4294967168  ;;  %p262_p10 = scmp.ne.s32.totalorder %s433_s9, 0 }
  0x34   : > { %v161_v0 = vld [vmem:[%s140_s22] sm:$0xff] (!%p262_p10) }
  0x35   : > { %160 = sbr.rel (%p262_p10) target bundleno = 60 (0x3c), region = 32  ;;  %162 = vst [vmem:[#allocation5] sm:$0xff] (!%p262_p10), %v161_v0 }
  0x3c PF: > { %p263_p9 = scmp.le.s32.totalorder %s433_s9, 0 }
  0x3d   : > { %v167_v1 = vld [vmem:[#allocation5] sm:$0xff] (!%p263_p9)  ;;  %v168_v2 = vld [vmem:[%s140_s22] sm:$0xff] (!%p263_p9) }
  0x3e   : > { %166 = sbr.rel (%p263_p9) target bundleno = 69 (0x45), region = 36  ;;  %v169_v3 = vmax.f32 (!%p263_p9), %v167_v1, %v168_v2 }
  0x40   : > { %170 = vst [vmem:[#allocation5] sm:$0xff] (!%p263_p9), %v169_v3 }
  0x45 PF: > { %p563_p11 = scmp.eq.s32.totalorder %s254_s12, 1  ;;  %s444_s17 = smov [#allocation5]  }
  0x46   : > { %s183_s24 = sshll.u32 %s444_s17, 4  ;;  %s184_s24 = int_to_ptr.vmem [resolvable:$true] %s183_s24 }
  0x47   : > { %s361_s25 = scalar_lea.vmem %s184_s24, 128  ;;  %p368_p12 = scmp.lt.s32.totalorder %s184_s24, %s184_s24 }
  0x48   : > { %p362_p7 = scmp.ne.s32.totalorder %s184_s24, %s361_s25  ;;  %p369_p0 = scmp.lt.s32.totalorder %s361_s25, %s361_s25 }
  0x4a   : > { %p363_p6 = pnand %p362_p7, %p563_p11  ;;  %p370_p2 = por %p369_p0, %p368_p12 }
  0x4c   : > { %p364_p8 = pneg %p363_p6 }
  0x4e   : > { %p371_p3 = pnand %p370_p2, %p364_p8 }
  0x50   : > { %374 = shalt.err (!%p371_p3)
}
  0x51   : > { %s375_s12 = scalar_lea.hbm %s608_s1, 128 }
  0x52   : > { %p376_p4 = scmp.ne.s32.totalorder %s608_s1, %s375_s12  ;;  %p381_p13 = scmp.lt.u32.totalorder %s375_s12, %s608_s1 }
  0x54   : > { %p377_p1 = pnand %p376_p4, %p563_p11 }
  0x56   : > { %p378_p5 = pneg %p377_p1 }
  0x58   : > { %p383_p10 = pnand %p381_p13, %p378_p5 }
  0x5a   : > { %386 = shalt.err (!%p383_p10)
}
  0x5b   : > { %272 = dma.vmem_to_hbm [thread:$0]  (%p563_p11), %s184_s24, 128, %s608_s1, [#allocation4]  }
  0x5c   : > { %416 = dma.done.wait (%p563_p11), [#allocation4], 128  }
  0x5d   : > { %418 = vsyncadd (%p563_p11), [#allocation4], 4294967168 }
  0x5e PF: > { %s15_s11 = sadd.s32 1, %s441_s11   ;;  %s615_s6 = smov %s425_s7 }
  0x5f   : > { %p12_p9 = scmp.ge.s32.totalorder %s15_s11, 4   ;;  %s616_s7 = smov %s429_s8 }
  0x60   : > { %s617_s8 = smov %s506_s18  ;;  %s618_s9 = smov %s437_s10 }
  0x61   : > { %s619_s10 = smov %s621_s13  ;;  %14 = sbr.rel (!%p12_p9) target bundleno = 5 (0x5), region = 70 }
  0x68   :  { %196 = vsyncpa [#allocation3], 1 }
  0x69   :  { %198 = vsyncpa [#allocation3 + $0x1], 1 }
  0x6a   :  { %199 = vsyncpa [#allocation4], 1 }
  0x6b   :  { %201 = vsyncpa [#allocation4 + $0x1], 1 }

</bundles_post_ra>
